<compile_context>
chip_gen: v6e
topology: v6e:2x2x1
jax: 0.10.0
libtpu: 0.0.40
codegen_flags: <defaults>
</compile_context>

<pallas_src>
import functools

import jax
import jax.numpy as jnp
from jax.experimental import pallas as pl
from jax.experimental.pallas import tpu as pltpu

EPS = 1e-5


# ----------------------------------------------------------------------------
# Fused unit_gcn Pallas kernel
# ----------------------------------------------------------------------------
def _unit_gcn_kernel(x_ref, w_ref, shift_ref, o_ref, *, add_identity):
    """One grid step handles TM (n,t) positions.

      x_ref     : (TM, V*Cin)      bf16, row m = (n,t), col = (v, ci)
      w_ref     : (V*Cin, V*Cout)  bf16 folded weight (graph agg + 1x1 conv +
                                   BN scale + `down` residual conv)
      shift_ref : (1, V*Cout)      f32 folded conv-bias / BN-shift / res consts
      o_ref     : (TM, V*Cout)     f32
    """
    x = x_ref[...]
    acc = jnp.dot(x, w_ref[...], preferred_element_type=jnp.float32)
    acc = acc + shift_ref[...]                      # (1, VCo) broadcasts over rows
    if add_identity:                                # identity residual (Cin == Cout)
        acc = acc + x.astype(jnp.float32)
    o_ref[...] = jnp.maximum(acc, 0.0).astype(o_ref.dtype)


def _round_up(a, m):
    return -(-a // m) * m


def _choose_tm(nt, target=256):
    """Row tile (multiple of 16 for bf16 sublane packing, <= target).

    Prefers >= 2 grid steps (v7x megacore) and a tile that divides nt exactly
    (no padded epilogue rows), when nt allows it."""
    tm = min(target, _round_up(nt, 16))
    if nt > 16 and _round_up(nt, tm) // tm < 2:
        tm = max(16, _round_up(-(-nt // 2), 16))
    for cand in range(tm, 15, -16):                 # largest mult-of-16 divisor
        if nt % cand == 0:
            return cand
    return tm


@functools.partial(jax.jit,
                   static_argnames=("adaptive", "with_res", "tm_target", "interpret"))
def unit_gcn_forward(x, params, *, adaptive="importance", with_res=True,
                     tm_target=256, interpret=False):
    """unit_gcn forward.  x: (N, Cin, T, V) float32  ->  (N, Cout, T, V) float32."""
    N, Cin, T, V = x.shape
    A = params["A"]
    K = int(A.shape[0])
    conv_w = params["conv_w"]                       # (K*Cout, Cin)
    conv_b = params["conv_b"]                       # (K*Cout,)
    Cout = conv_w.shape[0] // K

    # ---- effective adjacency (adaptive mode) ----
    if adaptive == "importance":
        A_eff = A * params["PA"]
    elif adaptive == "offset":
        A_eff = A + params["PA"]
    else:  # None or 'init'
        A_eff = A

    # ---- fold the main BatchNorm (inference mode) ----
    g, b, rm, rv = params["bn"]
    sc = g / jnp.sqrt(rv + EPS)
    sh = b - rm * sc

    # Fold 1x1 pre-conv + K-subset graph aggregation + BN scale into ONE weight:
    #   Wc[(v,ci),(w,c)] = sum_k A_eff[k,v,w] * conv_w[k*Cout+c, ci] * sc[c]
    wk = conv_w.reshape(K, Cout, Cin)                               # [k, c, ci]
    wc4 = jnp.einsum("kvw,kci->viwc", A_eff, wk) * sc[None, None, None, :]

    # conv bias propagated through the aggregation + BN shift (per (w, c)):
    colsum = jnp.sum(A_eff, axis=1)                                 # (K, V)
    shift = (jnp.einsum("kw,kc->wc", colsum, conv_b.reshape(K, Cout))
             * sc[None, :] + sh[None, :])                           # (V, Cout)

    # ---- residual branch ----
    add_identity = False
    if with_res and Cin != Cout:
        gd, bd, rmd, rvd = params["down_bn"]
        scd = gd / jnp.sqrt(rvd + EPS)
        shd = bd - rmd * scd
        # down conv folded onto the block-diagonal (v == w) of Wc
        wc4 = wc4 + jnp.einsum("vw,ci->viwc", jnp.eye(V, dtype=jnp.float32),
                               params["down_w"] * scd[:, None])
        shift = shift + (params["down_b"] * scd + shd)[None, :]
    elif with_res:
        add_identity = True            # added in f32 in the kernel epilogue

    VCi, VCo = V * Cin, V * Cout
    wc2d = wc4.reshape(VCi, VCo).astype(jnp.bfloat16)
    shift2d = shift.reshape(1, VCo).astype(jnp.float32)

    # ---- row tiling over (n, t) positions ----
    NT = N * T
    TM = _choose_tm(NT, tm_target)
    NTpad = _round_up(NT, TM)

    x_cl = jnp.transpose(x, (0, 2, 3, 1)).reshape(NT, VCi)          # channels-last
    if NTpad != NT:
        x_cl = jnp.pad(x_cl, ((0, NTpad - NT), (0, 0)))
    x2d = x_cl.astype(jnp.bfloat16)

    cost = pl.CostEstimate(
        flops=2 * NTpad * VCi * VCo,
        transcendentals=0,
        bytes_accessed=(NTpad * VCi * 2 + VCi * VCo * 2 + VCo * 4
                        + NTpad * VCo * 4),
    )

    out2d = pl.pallas_call(
        functools.partial(_unit_gcn_kernel, add_identity=add_identity),
        out_shape=jax.ShapeDtypeStruct((NTpad, VCo), jnp.float32),
        grid_spec=pltpu.PrefetchScalarGridSpec(
            num_scalar_prefetch=0,
            grid=(NTpad // TM,),
            in_specs=[
                pl.BlockSpec((TM, VCi), lambda i: (i, 0)),
                pl.BlockSpec((VCi, VCo), lambda i: (0, 0)),
                pl.BlockSpec((1, VCo), lambda i: (0, 0)),
            ],
            out_specs=pl.BlockSpec((TM, VCo), lambda i: (i, 0)),
        ),
        compiler_params=pltpu.CompilerParams(
            dimension_semantics=("parallel",),
            vmem_limit_bytes=32 * 1024 * 1024,
        ),
        cost_estimate=cost,
        interpret=interpret,
    )(x2d, wc2d, shift2d)

    out = out2d[:NT].reshape(N, T, V, Cout)
    return jnp.transpose(out, (0, 3, 1, 2))                         # (N, Cout, T, V)


# ----------------------------------------------------------------------------
# Deterministic parameter init (PyTorch-like) and pure-JAX reference
# ----------------------------------------------------------------------------
def _init_bn(key, c):
    k1, k2, k3 = jax.random.split(key, 3)
    gamma = 1.0 + 0.1 * jax.random.normal(k1, (c,), jnp.float32)
    beta = 0.1 * jax.random.normal(k2, (c,), jnp.float32)
    mean = 0.1 * jax.random.normal(k3, (c,), jnp.float32)
    var = jnp.ones((c,), jnp.float32)
    return gamma, beta, mean, var


def init_unit_gcn_params(key, in_channels, out_channels, A):
    K = int(A.shape[0])
    keys = jax.random.split(key, 6)
    bound = 1.0 / (in_channels ** 0.5)
    p = {
        "A": A,
        "PA": jnp.ones_like(A),        # adaptive='importance' -> init constant 1
        "conv_w": jax.random.uniform(keys[0], (K * out_channels, in_channels),
                                     jnp.float32, -bound, bound),
        "conv_b": jax.random.uniform(keys[1], (K * out_channels,),
                                     jnp.float32, -bound, bound),
        "bn": _init_bn(keys[2], out_channels),
    }
    if in_channels != out_channels:
        p["down_w"] = jax.random.uniform(keys[3], (out_channels, in_channels),
                                         jnp.float32, -bound, bound)
        p["down_b"] = jax.random.uniform(keys[4], (out_channels,),
                                         jnp.float32, -bound, bound)
        p["down_bn"] = _init_bn(keys[5], out_channels)
    return p


def unit_gcn_reference(x, params, *, adaptive="importance", with_res=True):
    """Pure-JAX mirror of the PyTorch forward (inference-mode BN)."""
    N, Cin, T, V = x.shape
    A = params["A"]
    K = int(A.shape[0])
    conv_w, conv_b = params["conv_w"], params["conv_b"]
    Cout = conv_w.shape[0] // K
    if adaptive == "importance":
        A_eff = A * params["PA"]
    elif adaptive == "offset":
        A_eff = A + params["PA"]
    else:
        A_eff = A
    hi = jax.lax.Precision.HIGHEST
    y = jnp.einsum("oi,nitv->notv", conv_w, x, precision=hi) + conv_b[None, :, None, None]
    y = y.reshape(N, K, Cout, T, V)
    agg = jnp.einsum("nkctv,kvw->nctw", y, A_eff, precision=hi)
    g, b, rm, rv = params["bn"]
    sc = g / jnp.sqrt(rv + EPS)
    sh = b - rm * sc
    out = agg * sc[None, :, None, None] + sh[None, :, None, None]
    if with_res:
        if Cin != Cout:
            gd, bd, rmd, rvd = params["down_bn"]
            scd = gd / jnp.sqrt(rvd + EPS)
            shd = bd - rmd * scd
            r = (jnp.einsum("oi,nitv->notv", params["down_w"], x, precision=hi)
                 + params["down_b"][None, :, None, None])
            r = r * scd[None, :, None, None] + shd[None, :, None, None]
        else:
            r = x
        out = out + r
    return jnp.maximum(out, 0.0)


# ----------------------------------------------------------------------------
if __name__ == "__main__":
    N, T, V, K = 2, 16, 16, 3
    key = jax.random.PRNGKey(0)
    k_a, k_x1, k_p1, k_x2, k_p2 = jax.random.split(key, 5)

    # Graph() is not provided by the reference code; synthesize a deterministic
    # row-stochastic adjacency with K subsets.
    A = jax.nn.softmax(jax.random.normal(k_a, (K, V, V), jnp.float32), axis=-1)

    # case 1: in_channels != out_channels (exercises the conv+BN `down` residual)
    cin1, cout1 = 4, 32
    x1 = jax.random.normal(k_x1, (N, cin1, T, V), jnp.float32)
    p1 = init_unit_gcn_params(k_p1, cin1, cout1, A)
    out1 = jax.block_until_ready(unit_gcn_forward(x1, p1))
    ref1 = unit_gcn_reference(x1, p1)
    assert out1.shape == (N, cout1, T, V), out1.shape
    assert bool(jnp.all(jnp.isfinite(out1)))
    err1 = float(jnp.max(jnp.abs(out1 - ref1)))
    assert bool(jnp.allclose(out1, ref1, rtol=2e-2, atol=2e-2)), err1

    # case 2: in_channels == out_channels (identity residual, f32 epilogue add)
    cin2 = cout2 = 32
    x2 = jax.random.normal(k_x2, (N, cin2, T, V), jnp.float32)
    p2 = init_unit_gcn_params(k_p2, cin2, cout2, A)
    out2 = jax.block_until_ready(unit_gcn_forward(x2, p2))
    ref2 = unit_gcn_reference(x2, p2)
    assert out2.shape == (N, cout2, T, V), out2.shape
    assert bool(jnp.all(jnp.isfinite(out2)))
    err2 = float(jnp.max(jnp.abs(out2 - ref2)))
    assert bool(jnp.allclose(out2, ref2, rtol=2e-2, atol=2e-2)), err2

    print("KERNEL_OK")
</pallas_src>

<mosaic_0001>
module attributes {stable_mosaic.version = 11 : i64} {
  func.func @_unit_gcn_kernel(%arg0: i32, %arg1: memref<16x64xbf16, #tpu.memory_space<vmem>>, %arg2: memref<64x512xbf16, #tpu.memory_space<vmem>>, %arg3: memref<1x512xf32, #tpu.memory_space<vmem>>, %arg4: memref<16x512xf32, #tpu.memory_space<vmem>>) attributes {dimension_semantics = [#tpu.dimension_semantics<parallel>], iteration_bounds = array<i64: 2>, scalar_prefetch = 0 : i64, scratch_operands = 0 : i64, tpu.core_type = #tpu.core_type<tc>, window_params = [{transform_indices = @transform_0, window_bounds = array<i64: 16, 64>}, {pipeline_mode = #tpu.pipeline_mode<synchronous>, transform_indices = @transform_1, window_bounds = array<i64: 64, 512>}, {pipeline_mode = #tpu.pipeline_mode<synchronous>, transform_indices = @transform_2, window_bounds = array<i64: 1, 512>}, {transform_indices = @transform_3, window_bounds = array<i64: 16, 512>}]} {
    %c0 = arith.constant 0 : index
    %c0_0 = arith.constant 0 : index
    %0 = vector.load %arg1[%c0, %c0_0] : memref<16x64xbf16, #tpu.memory_space<vmem>>, vector<16x64xbf16>
    %c0_1 = arith.constant 0 : index
    %c0_2 = arith.constant 0 : index
    %1 = vector.load %arg2[%c0_1, %c0_2] : memref<64x512xbf16, #tpu.memory_space<vmem>>, vector<64x512xbf16>
    %cst = arith.constant dense<0.000000e+00> : vector<16x512xf32>
    %2 = tpu.matmul %0, %1, %cst {dimension_numbers = #tpu.dot_dimension_numbers<[1], [0], [0], [1], [0, 0, 1, 1], [], []>} : vector<16x64xbf16>, vector<64x512xbf16>, vector<16x512xf32> -> vector<16x512xf32>
    %c0_3 = arith.constant 0 : index
    %c0_4 = arith.constant 0 : index
    %3 = vector.load %arg3[%c0_3, %c0_4] : memref<1x512xf32, #tpu.memory_space<vmem>>, vector<1x512xf32>
    %4 = vector.broadcast %3 : vector<1x512xf32> to vector<16x512xf32>
    %5 = arith.addf %2, %4 : vector<16x512xf32>
    %cst_5 = arith.constant 0.000000e+00 : f32
    %6 = vector.broadcast %cst_5 : f32 to vector<16x512xf32>
    %7 = arith.maximumf %5, %6 : vector<16x512xf32>
    %c0_6 = arith.constant 0 : index
    %c0_7 = arith.constant 0 : index
    %8 = vector.load %arg4[%c0_6, %c0_7] : memref<16x512xf32, #tpu.memory_space<vmem>>, vector<16x512xf32>
    tpu.vector_store %arg4[%c0_6, %c0_7], %7 {strides = array<i32>} : memref<16x512xf32, #tpu.memory_space<vmem>>, vector<16x512xf32>,
    return
  }
  func.func @transform_0(%arg0: i32) -> (i32, i32) {
    %c0_i32 = arith.constant 0 : i32
    %c0_i32_0 = arith.constant 0 : i32
    return %arg0, %c0_i32 : i32, i32
  }
  func.func @transform_1(%arg0: i32) -> (i32, i32) {
    %c0_i32 = arith.constant 0 : i32
    %c0_i32_0 = arith.constant 0 : i32
    %c0_i32_1 = arith.constant 0 : i32
    return %c0_i32, %c0_i32_0 : i32, i32
  }
  func.func @transform_2(%arg0: i32) -> (i32, i32) {
    %c0_i32 = arith.constant 0 : i32
    %c0_i32_0 = arith.constant 0 : i32
    %c0_i32_1 = arith.constant 0 : i32
    return %c0_i32, %c0_i32_0 : i32, i32
  }
  func.func @transform_3(%arg0: i32) -> (i32, i32) {
    %c0_i32 = arith.constant 0 : i32
    %c0_i32_0 = arith.constant 0 : i32
    return %arg0, %c0_i32 : i32, i32
  }
}

</mosaic_0001>

<bundles_post_ra>
// kernel: unit_gcn_forward.1
= control target key start
LH: loop header
LB: loop body
LE: loop exit
PB: predicated region body
PF: predicated region fallthrough
CT: control target
= control target key end

     0   :  { %s561_s12 = smov 0   ;;  %s633_s0 = inlined_call_operand.vmem [shape: bf16[32,64], index: 0, kind: input, shape index: {}]   ;;  %s634_s1 = inlined_call_operand.vmem [shape: bf16[64,512], index: 1, kind: input, shape index: {}]   ;;  %s635_s2 = inlined_call_operand.vmem [shape: f32[1,512], index: 2, kind: input, shape index: {}]   ;;  %s636_s3 = inlined_call_operand.vmem [shape: f32[32,512], index: 3, kind: output, shape index: {}]  }
   0x1 LB: > { %s466_s13 = sadd.s32 4294967295, %s538_s12   ;;  %p470_p0 = scmp.ge.s32.totalorder %s538_s12, 1  ;;  %s538_s12 = sphi %s561_s12, %s13_s12  }
   0x2   : > { %p138_p1 = scmp.lt.s32.totalorder %s538_s12, 3 }
   0x4   : > { %p139_p2 = pnand %p470_p0, %p138_p1 }
   0x5   : > { %s471_s16 = sshll.u32 (!%p139_p2), %s466_s13, 1 }
   0x6   : > { %142 = sbr.rel (%p139_p2) target bundleno = 233 (0xe9), region = 32  ;;  %p164_p3 = scmp.lt.s32.totalorder (!%p139_p2), %s471_s16, 3 }
   0xb   : > { %v507_v0 = vld [vmem:[%s634_s1 + $0x64] ss:$16 sps:$4 sm:$0xff]   ;;  %v509_v1 = vld [vmem:[%s634_s1 + $0x6c] ss:$16 sps:$4 sm:$0xff]   ;;  %v540_v2 = vmov 0   ;;  %s638_s16 = smov (!%p164_p3, %s471_s16), 3  ;;  %v197_v18 = vlaneseq }
   0xc   : > { %338 = vmatprep.mubr.bf16.mxu0 %v540_v2  ;;  %381 = vmatprep.mubr.bf16.mxu1 %v540_v2  ;;  %v511_v3 = vld [vmem:[%s634_s1 + $0x60] ss:$16 sps:$4 sm:$0xff]   ;;  %v512_v4 = vld [vmem:[%s634_s1 + $0x68] ss:$16 sps:$4 sm:$0xff]   ;;  %v513_v5 = vld [vmem:[%s634_s1 + $0x44] ss:$16 sps:$4 sm:$0xff]  }
   0xd   : > { %314 = vmatprep.subr.bf16.mxu0 %v507_v0  ;;  %357 = vmatprep.subr.bf16.mxu1 %v509_v1  ;;  %v515_v6 = vld [vmem:[%s634_s1 + $0x4c] ss:$16 sps:$4 sm:$0xff]   ;;  %v517_v7 = vld [vmem:[%s634_s1 + $0x40] ss:$16 sps:$4 sm:$0xff]   ;;  %v518_v8 = vld [vmem:[%s634_s1 + $0x48] ss:$16 sps:$4 sm:$0xff]  }
   0xe   : > { %315 = vmatpush1.bf16.msra.mxu0 %v511_v3  ;;  %358 = vmatpush1.bf16.msra.mxu1 %v512_v4  ;;  %v519_v9 = vld [vmem:[%s634_s1 + $0x24] ss:$16 sps:$4 sm:$0xff]   ;;  %s472_s6 = sshll.u32 %s638_s16, 2  ;;  %v521_v10 = vld [vmem:[%s634_s1 + $0x2c] ss:$16 sps:$4 sm:$0xff]   ;;  %vm302_vm0 = vcmask 523264  }
   0xf   : > { %316 = vmatprep.subr.bf16.mxu0 %v513_v5  ;;  %359 = vmatprep.subr.bf16.mxu1 %v515_v6  ;;  %v523_v11 = vld [vmem:[%s634_s1 + $0x20] ss:$16 sps:$4 sm:$0xff]   ;;  %v524_v12 = vld [vmem:[%s634_s1 + $0x28] ss:$16 sps:$4 sm:$0xff]   ;;  %v525_v13 = vld [vmem:[%s634_s1 + $0x4] ss:$16 sps:$4 sm:$0xff]   ;;  %s167_s21 = scalar_lea.vmem %s633_s0, %s472_s6 }
  0x10   : > { %v527_v14 = vld [vmem:[%s634_s1 + $0xc] ss:$16 sps:$4 sm:$0xff]   ;;  %v529_v15 = vld [vmem:[%s634_s1] ss:$16 sps:$4 sm:$0xff]   ;;  %v530_v16 = vld [vmem:[%s634_s1 + $0x8] ss:$16 sps:$4 sm:$0xff]  }
  0x11   : > { %v531_v17 = vld [vmem:[%s167_s21] sm:$0xff]   ;;  %v198_v19 = vshrl.u32 %v197_v18, 7  ;;  %s497_s28 = sshll.u32 %s638_s16, 5 }
  0x12   : > { %317 = vmatpush1.bf16.msra.mxu0 %v517_v7  ;;  %360 = vmatpush1.bf16.msra.mxu1 %v518_v8  ;;  %v195_v22 = vld [vmem:[%s635_s2] sm:$0xf]  ;;  %s174_s4 = scalar_lea.vmem %s636_s3, %s497_s28 }
  0x13   : > { %318 = vmatprep.subr.bf16.mxu0 %v519_v9  ;;  %361 = vmatprep.subr.bf16.mxu1 %v521_v10  ;;  %v199_v20 = vsub.s32 0, %v198_v19  ;;  %v207_v21 = vsub.s32 2, %v198_v19  ;;  %v203_v23 = vsub.s32 1, %v198_v19  ;;  %v211_v24 = vsub.s32 3, %v198_v19 }
  0x15   : > { %v200_v25 = vrot.slane %v195_v22, %v199_v20  ;;  %v208_v26 = vrot.slane %v195_v22, %v207_v21  ;;  %v204_v27 = vrot.slane %v195_v22, %v203_v23  ;;  %v212_v28 = vrot.slane %v195_v22, %v211_v24 }
  0x16   : > { %319 = vmatpush1.bf16.msra.mxu0 %v523_v11  ;;  %362 = vmatpush1.bf16.msra.mxu1 %v524_v12 }
  0x17   : > { %320 = vmatprep.subr.bf16.mxu0 %v525_v13  ;;  %363 = vmatprep.subr.bf16.mxu1 %v527_v14 }
  0x1a   : > { %321 = vmatpush1.bf16.msra.mxu0 %v529_v15  ;;  %364 = vmatpush1.bf16.msra.mxu1 %v530_v16 }
  0x1d   : > { %493 = vmatmul.mubr.msk.bf16.vlgmr.msra.gmra.mxu0 %vm302_vm0, %v531_v17  ;;  %494 = vmatmul.mubr.msk.bf16.vlgmr.msra.gmra.mxu1 %vm302_vm0, %v531_v17 }
  0xdd   : > { %v340_v29 = vpop.f32.mrf.mxu0  ;;  %v383_v30 = vpop.f32.mrf.mxu1 }
  0xde   : > { %v341_v31 = vadd.f32 %v340_v29, %v200_v25  ;;  %v384_v32 = vadd.f32 %v383_v30, %v208_v26 }
  0xdf   : > { %v342_v33 = vpop.f32.mrf.mxu0  ;;  %v385_v34 = vpop.f32.mrf.mxu1 }
  0xe0   : > { %v392_v35 = vmax.f32 %v341_v31, 0.0  ;;  %v394_v36 = vmax.f32 %v384_v32, 0.0  ;;  %v343_v37 = vadd.f32 %v342_v33, %v204_v27  ;;  %v386_v38 = vadd.f32 %v385_v34, %v212_v28 }
  0xe1   : > { %v344_v39 = vpop.f32.mrf.mxu0  ;;  %v387_v40 = vpop.f32.mrf.mxu1 }
  0xe2   : > { %400 = vst [vmem:[%s174_s4] sm:$0xff] %v392_v35  ;;  %402 = vst [vmem:[%s174_s4 + $0x10] sm:$0xff] %v394_v36  ;;  %v393_v41 = vmax.f32 %v343_v37, 0.0  ;;  %v395_v42 = vmax.f32 %v386_v38, 0.0  ;;  %v345_v43 = vadd.f32 %v344_v39, %v200_v25  ;;  %v388_v44 = vadd.f32 %v387_v40, %v208_v26 }
  0xe3   : > { %v346_v45 = vpop.f32.mrf.mxu0  ;;  %v389_v46 = vpop.f32.mrf.mxu1 }
  0xe4   : > { %401 = vst [vmem:[%s174_s4 + $0x8] sm:$0xff] %v393_v41  ;;  %403 = vst [vmem:[%s174_s4 + $0x18] sm:$0xff] %v395_v42  ;;  %v396_v47 = vmax.f32 %v345_v43, 0.0  ;;  %v398_v48 = vmax.f32 %v388_v44, 0.0  ;;  %v347_v49 = vadd.f32 %v346_v45, %v204_v27  ;;  %v390_v50 = vadd.f32 %v389_v46, %v212_v28 }
  0xe6   : > { %404 = vst [vmem:[%s174_s4 + $0x20] sm:$0xff] %v396_v47  ;;  %406 = vst [vmem:[%s174_s4 + $0x30] sm:$0xff] %v398_v48  ;;  %v397_v51 = vmax.f32 %v347_v49, 0.0  ;;  %v399_v52 = vmax.f32 %v390_v50, 0.0 }
  0xe8   : > { %405 = vst [vmem:[%s174_s4 + $0x28] sm:$0xff] %v397_v51  ;;  %407 = vst [vmem:[%s174_s4 + $0x38] sm:$0xff] %v399_v52 }
  0xe9 PF: > { %s13_s12 = sadd.s32 1, %s538_s12  }
  0xea   : > { %p10_p4 = scmp.ge.s32.totalorder %s13_s12, 4  }
  0xec   :  { %12 = sbr.rel (!%p10_p4) target bundleno = 1 (0x1), region = 62 }

</bundles_post_ra>
